<compile_context>
chip_gen: v5e
topology: v5e:2x2
jax: 0.10.0
libtpu: 0.0.40
codegen_flags: <defaults>
</compile_context>

<pallas_src>
import functools

import jax
import jax.numpy as jnp
from jax import lax
from jax.experimental import pallas as pl
from jax.experimental.pallas import tpu as pltpu

_VMEM_LIMIT_BYTES = 32 * 1024 * 1024


def _gram_softmax_kernel(gamma_ref, x_ref, attn_ref, gram_ref, *, valid_c):
    """Pass 1: accumulate the Gram matrix over N tiles; on the last tile
    finalize the normalized (cosine) energy, its max-subtracted softmax,
    fold gamma in and store the result in bf16."""
    j = pl.program_id(1)

    @pl.when(j == 0)
    def _init():
        gram_ref[...] = jnp.zeros_like(gram_ref)

    # x is already bf16 (cast once in the wrapper); contraction on the last
    # dim of both operands (A @ A^T form) -> no transpose / (N, C) temporary.
    xb = x_ref[0]                                               # (Cp, tN) bf16
    gram_ref[...] += lax.dot_general(
        xb, xb, dimension_numbers=(((1,), (1,)), ((), ())),
        preferred_element_type=jnp.float32)

    @pl.when(j == pl.num_programs(1) - 1)
    def _finalize():
        g = gram_ref[...]                                       # (Cp, Cp) f32
        cp = g.shape[0]
        rows = lax.broadcasted_iota(jnp.int32, (cp, cp), 0)
        cols = lax.broadcasted_iota(jnp.int32, (cp, cp), 1)

        # Channel norms from the Gram diagonal:
        #   rsqrt(max(||x_c||^2, 1e-12)) == 1 / clamp(||x_c||, 1e-6)
        d = jnp.where(rows == cols, g, 0.0)                     # masked once
        inv_col = lax.rsqrt(
            jnp.maximum(jnp.sum(d, axis=1, keepdims=True), 1e-12))  # (Cp, 1)
        inv_row = lax.rsqrt(
            jnp.maximum(jnp.sum(d, axis=0, keepdims=True), 1e-12))  # (1, Cp)

        energy = g * inv_col * inv_row                          # cosines in [-1, 1]
        # Padded columns hold 0 and the diagonal (a valid column) is ~1 >= 0,
        # so padded entries never move the row max; they only need masking
        # after the exp so they don't inflate the softmax denominator.
        max_e = jnp.max(energy, axis=-1, keepdims=True)
        e_exp = jnp.exp(max_e - energy)                         # bounded in [0, 2]
        if valid_c < cp:
            e_exp = jnp.where(cols < valid_c, e_exp, 0.0)       # drop padded channels
        denom = jnp.sum(e_exp, axis=-1, keepdims=True)
        attn = e_exp * pl.reciprocal(denom, approx=True)
        # Fold gamma here so pass 2's epilogue is a single add; store bf16.
        attn_ref[0] = (gamma_ref[0] * attn).astype(attn_ref.dtype)


def _value_kernel(attn_ref, x_ref, out_ref):
    """Pass 2: out_tile = (gamma-folded attn) @ x_tile + x_tile."""
    x = x_ref[0]                                                # (Cp, tN) bf16
    o = jnp.dot(attn_ref[0], x, preferred_element_type=jnp.float32)
    out_ref[0] = o + x.astype(jnp.float32)


def _round_up(v, m):
    return (v + m - 1) // m * m


@jax.jit
def normed_cam_module(x, gamma):
    """x: (B, C, H, W) float32 (NCHW); gamma: (1,) float32 learnable scalar.
    Returns gamma * (channel_attention @ value) + x, matching the PyTorch module
    (up to bf16 MXU / streamed-operand precision)."""
    B, C, H, W = x.shape
    N = H * W

    # Channel (sublane) padding; 16 keeps bf16 sublane packing happy.
    C_pad = _round_up(max(C, 16), 16)

    # Tile-size selection (review items 3 & 6): gate tn on C_pad so the pass-1
    # working set (f32 gram scratch + bf16 attn out + bf16 x blocks) stays
    # inside v7x's 64 MiB VMEM, and pad N to the tile granule so tn never
    # degenerates to 128 for awkward H*W.
    tn_cands = (512, 256) if C_pad >= 1024 else (1024, 512)
    N_pad = _round_up(N, 128)
    if N_pad <= tn_cands[0]:
        tn = N_pad                                   # single lane-dense tile
    else:
        N_pad = _round_up(N, tn_cands[-1])
        tn = next(t for t in tn_cands if N_pad % t == 0)
    n_tiles = N_pad // tn

    # Single padded copy of x, in bf16 (review item 2): halves the bytes
    # streamed by both passes. Zero-padded rows/cols add nothing to the Gram.
    x_flat = x.reshape(B, C, N).astype(jnp.bfloat16)
    if (C_pad, N_pad) != (C, N):
        x_flat = jnp.pad(x_flat, ((0, 0), (0, C_pad - C), (0, N_pad - N)))

    gamma_f32 = gamma.astype(jnp.float32)

    # Pass 1: attention (with gamma folded in), shape (B, Cp, Cp), bf16.
    attn = pl.pallas_call(
        functools.partial(_gram_softmax_kernel, valid_c=C),
        out_shape=jax.ShapeDtypeStruct((B, C_pad, C_pad), jnp.bfloat16),
        grid_spec=pltpu.PrefetchScalarGridSpec(
            num_scalar_prefetch=0,
            grid=(B, n_tiles),
            in_specs=[
                pl.BlockSpec(memory_space=pltpu.MemorySpace.SMEM),        # gamma
                pl.BlockSpec((1, C_pad, tn), lambda b, j: (b, 0, j)),     # x (bf16)
            ],
            out_specs=pl.BlockSpec((1, C_pad, C_pad), lambda b, j: (b, 0, 0)),
            scratch_shapes=[pltpu.VMEM((C_pad, C_pad), jnp.float32)],     # f32 accumulator
        ),
        compiler_params=pltpu.CompilerParams(
            dimension_semantics=("parallel", "arbitrary"),
            vmem_limit_bytes=_VMEM_LIMIT_BYTES),
    )(gamma_f32, x_flat)

    # Pass 2: out = attn @ x + x, tiled over N; both grid axes parallel so
    # v7x's two TensorCores have work even at B=1. attn's index map is
    # j-invariant -> DMA'd once per batch.
    out_flat = pl.pallas_call(
        _value_kernel,
        out_shape=jax.ShapeDtypeStruct((B, C_pad, N_pad), jnp.float32),
        grid_spec=pltpu.PrefetchScalarGridSpec(
            num_scalar_prefetch=0,
            grid=(B, n_tiles),
            in_specs=[
                pl.BlockSpec((1, C_pad, C_pad), lambda b, j: (b, 0, 0)),  # attn (bf16)
                pl.BlockSpec((1, C_pad, tn), lambda b, j: (b, 0, j)),     # x (bf16)
            ],
            out_specs=pl.BlockSpec((1, C_pad, tn), lambda b, j: (b, 0, j)),
        ),
        compiler_params=pltpu.CompilerParams(
            dimension_semantics=("parallel", "parallel"),
            vmem_limit_bytes=_VMEM_LIMIT_BYTES),
    )(attn, x_flat)

    return out_flat[:, :C, :N].reshape(B, C, H, W)


def _reference(x, gamma):
    """Pure-JAX f32 reference mirroring the PyTorch forward."""
    B, C, H, W = x.shape
    q = x.reshape(B, C, -1).astype(jnp.float32)
    qn = q / jnp.maximum(jnp.linalg.norm(q, axis=-1, keepdims=True), 1e-6)
    energy = jnp.einsum("bcn,bdn->bcd", qn, qn)
    energy_new = jnp.max(energy, axis=-1, keepdims=True) - energy
    attn = jax.nn.softmax(energy_new, axis=-1)
    out = jnp.einsum("bcd,bdn->bcn", attn, q).reshape(B, C, H, W)
    return gamma[0] * out + x


if __name__ == "__main__":
    key = jax.random.PRNGKey(0)
    B, C, H, W = 2, 4, 16, 16
    x = jax.random.normal(key, (B, C, H, W), dtype=jnp.float32)

    gamma_zero = jnp.zeros((1,), dtype=jnp.float32)      # PyTorch init (gamma = 0)
    gamma_test = jnp.array([0.5], dtype=jnp.float32)     # exercises attention path

    out0 = jax.block_until_ready(normed_cam_module(x, gamma_zero))
    out1 = jax.block_until_ready(normed_cam_module(x, gamma_test))

    ref0 = _reference(x, gamma_zero)
    ref1 = _reference(x, gamma_test)
    # bf16 streamed operands + approx reciprocal -> relaxed tolerance vs f32 ref.
    assert jnp.allclose(out0, ref0, atol=5e-2, rtol=5e-2)
    assert jnp.allclose(out1, ref1, atol=5e-2, rtol=5e-2)

    print("KERNEL_OK")
</pallas_src>

<mosaic_0001>
module attributes {stable_mosaic.version = 11 : i64} {
  func.func @_gram_softmax_kernel(%arg0: i32, %arg1: i32, %arg2: memref<1xf32, #tpu.memory_space<smem>>, %arg3: memref<1x16x256xbf16, #tpu.memory_space<vmem>>, %arg4: memref<1x16x16xbf16, #tpu.memory_space<vmem>>, %arg5: memref<16x16xf32, #tpu.memory_space<vmem>>) attributes {dimension_semantics = [#tpu.dimension_semantics<parallel>, #tpu.dimension_semantics<arbitrary>], iteration_bounds = array<i64: 2, 1>, scalar_prefetch = 0 : i64, scratch_operands = 1 : i64, tpu.core_type = #tpu.core_type<tc>, window_params = [{transform_indices = @transform_0, window_bounds = array<i64: 1>}, {transform_indices = @transform_1, window_bounds = array<i64: 1, 16, 256>}, {transform_indices = @transform_2, window_bounds = array<i64: 1, 16, 16>}]} {
    %c0_i32 = arith.constant 0 : i32
    %0 = arith.cmpi eq, %arg1, %c0_i32 : i32
    %1 = arith.extui %0 : i1 to i32
    %c0_i32_0 = arith.constant 0 : i32
    %2 = arith.cmpi ne, %1, %c0_i32_0 : i32
    scf.if %2 {
      %cst_9 = arith.constant 0.000000e+00 : f32
      %12 = vector.broadcast %cst_9 : f32 to vector<16x16xf32>
      %c0_10 = arith.constant 0 : index
      %c0_11 = arith.constant 0 : index
      %13 = vector.load %arg5[%c0_10, %c0_11] : memref<16x16xf32, #tpu.memory_space<vmem>>, vector<16x16xf32>
      tpu.vector_store %arg5[%c0_10, %c0_11], %12 {strides = array<i32>} : memref<16x16xf32, #tpu.memory_space<vmem>>, vector<16x16xf32>,
    } else {
    }
    %c0 = arith.constant 0 : index
    %c0_1 = arith.constant 0 : index
    %c0_2 = arith.constant 0 : index
    %3 = vector.load %arg3[%c0, %c0_1, %c0_2] : memref<1x16x256xbf16, #tpu.memory_space<vmem>>, vector<1x16x256xbf16>
    %4 = vector.shape_cast %3 : vector<1x16x256xbf16> to vector<16x256xbf16>
    %c0_3 = arith.constant 0 : index
    %c0_4 = arith.constant 0 : index
    %5 = vector.load %arg5[%c0_3, %c0_4] : memref<16x16xf32, #tpu.memory_space<vmem>>, vector<16x16xf32>
    %cst = arith.constant dense<0.000000e+00> : vector<16x16xf32>
    %6 = tpu.matmul %4, %4, %cst {dimension_numbers = #tpu.dot_dimension_numbers<[1], [1], [0], [0], [0, 0, 1, 0], [], []>} : vector<16x256xbf16>, vector<16x256xbf16>, vector<16x16xf32> -> vector<16x16xf32>
    %7 = arith.addf %5, %6 : vector<16x16xf32>
    %c0_5 = arith.constant 0 : index
    %c0_6 = arith.constant 0 : index
    %8 = vector.load %arg5[%c0_5, %c0_6] : memref<16x16xf32, #tpu.memory_space<vmem>>, vector<16x16xf32>
    tpu.vector_store %arg5[%c0_5, %c0_6], %7 {strides = array<i32>} : memref<16x16xf32, #tpu.memory_space<vmem>>, vector<16x16xf32>,
    %c0_i32_7 = arith.constant 0 : i32
    %9 = arith.cmpi eq, %arg1, %c0_i32_7 : i32
    %10 = arith.extui %9 : i1 to i32
    %c0_i32_8 = arith.constant 0 : i32
    %11 = arith.cmpi ne, %10, %c0_i32_8 : i32
    scf.if %11 {
      %c0_9 = arith.constant 0 : index
      %c0_10 = arith.constant 0 : index
      %12 = vector.load %arg5[%c0_9, %c0_10] : memref<16x16xf32, #tpu.memory_space<vmem>>, vector<16x16xf32>
      %13 = tpu.iota {dimensions = array<i32: 0>} : vector<16x16xi32>
      %14 = tpu.iota {dimensions = array<i32: 1>} : vector<16x16xi32>
      %15 = arith.cmpi eq, %13, %14 : vector<16x16xi32>
      %cst_11 = arith.constant 0.000000e+00 : f32
      %16 = vector.broadcast %cst_11 : f32 to vector<16x16xf32>
      %17 = arith.select %15, %12, %16 : vector<16x16xi1>, vector<16x16xf32>
      %cst_12 = arith.constant dense<0.000000e+00> : vector<16xf32>
      %18 = vector.multi_reduction <add>, %17, %cst_12 [1] : vector<16x16xf32> to vector<16xf32>
      %19 = vector.shape_cast %18 : vector<16xf32> to vector<16x1xf32>
      %cst_13 = arith.constant 9.99999996E-13 : f32
      %20 = vector.broadcast %cst_13 : f32 to vector<16x1xf32>
      %21 = arith.maximumf %19, %20 : vector<16x1xf32>
      %22 = math.rsqrt %21 : vector<16x1xf32>
      %cst_14 = arith.constant dense<0.000000e+00> : vector<16xf32>
      %23 = vector.multi_reduction <add>, %17, %cst_14 [0] : vector<16x16xf32> to vector<16xf32>
      %24 = vector.shape_cast %23 : vector<16xf32> to vector<1x16xf32>
      %cst_15 = arith.constant 9.99999996E-13 : f32
      %25 = vector.broadcast %cst_15 : f32 to vector<1x16xf32>
      %26 = arith.maximumf %24, %25 : vector<1x16xf32>
      %27 = math.rsqrt %26 : vector<1x16xf32>
      %28 = vector.broadcast %22 : vector<16x1xf32> to vector<16x16xf32>
      %29 = arith.mulf %12, %28 : vector<16x16xf32>
      %30 = vector.broadcast %27 : vector<1x16xf32> to vector<16x16xf32>
      %31 = arith.mulf %29, %30 : vector<16x16xf32>
      %cst_16 = arith.constant dense<0xFF800000> : vector<16xf32>
      %32 = vector.multi_reduction <maximumf>, %31, %cst_16 [1] : vector<16x16xf32> to vector<16xf32>
      %33 = vector.shape_cast %32 : vector<16xf32> to vector<16x1xf32>
      %34 = vector.broadcast %33 : vector<16x1xf32> to vector<16x16xf32>
      %35 = arith.subf %34, %31 : vector<16x16xf32>
      %36 = math.exp %35 : vector<16x16xf32>
      %c4_i32 = arith.constant 4 : i32
      %37 = vector.broadcast %c4_i32 : i32 to vector<16x16xi32>
      %38 = arith.cmpi slt, %14, %37 : vector<16x16xi32>
      %cst_17 = arith.constant 0.000000e+00 : f32
      %39 = vector.broadcast %cst_17 : f32 to vector<16x16xf32>
      %40 = arith.select %38, %36, %39 : vector<16x16xi1>, vector<16x16xf32>
      %cst_18 = arith.constant dense<0.000000e+00> : vector<16xf32>
      %41 = vector.multi_reduction <add>, %40, %cst_18 [1] : vector<16x16xf32> to vector<16xf32>
      %42 = vector.shape_cast %41 : vector<16xf32> to vector<16x1xf32>
      %43 = tpu.reciprocal %42 {approx = true} : vector<16x1xf32> -> vector<16x1xf32>
      %44 = vector.broadcast %43 : vector<16x1xf32> to vector<16x16xf32>
      %45 = arith.mulf %40, %44 : vector<16x16xf32>
      %c0_19 = arith.constant 0 : index
      %46 = memref.load %arg2[%c0_19] : memref<1xf32, #tpu.memory_space<smem>>
      %47 = vector.broadcast %46 : f32 to vector<16x16xf32>
      %48 = arith.mulf %47, %45 : vector<16x16xf32>
      %49 = arith.truncf %48 : vector<16x16xf32> to vector<16x16xbf16>
      %c0_20 = arith.constant 0 : index
      %c0_21 = arith.constant 0 : index
      %c0_22 = arith.constant 0 : index
      %50 = vector.load %arg4[%c0_20, %c0_21, %c0_22] : memref<1x16x16xbf16, #tpu.memory_space<vmem>>, vector<1x16x16xbf16>
      %51 = vector.shape_cast %50 : vector<1x16x16xbf16> to vector<16x16xbf16>
      %52 = vector.shape_cast %49 : vector<16x16xbf16> to vector<1x16x16xbf16>
      tpu.vector_store %arg4[%c0_20, %c0_21, %c0_22], %52 {strides = array<i32>} : memref<1x16x16xbf16, #tpu.memory_space<vmem>>, vector<1x16x16xbf16>,
    } else {
    }
    return
  }
  func.func @transform_0(%arg0: i32, %arg1: i32) -> i32 {
    %c0_i32 = arith.constant 0 : i32
    %c0_i32_0 = arith.constant 0 : i32
    return %c0_i32 : i32
  }
  func.func @transform_1(%arg0: i32, %arg1: i32) -> (i32, i32, i32) {
    %c0_i32 = arith.constant 0 : i32
    %c0_i32_0 = arith.constant 0 : i32
    return %arg0, %c0_i32, %arg1 : i32, i32, i32
  }
  func.func @transform_2(%arg0: i32, %arg1: i32) -> (i32, i32, i32) {
    %c0_i32 = arith.constant 0 : i32
    %c0_i32_0 = arith.constant 0 : i32
    %c0_i32_1 = arith.constant 0 : i32
    return %arg0, %c0_i32, %c0_i32_0 : i32, i32, i32
  }
}

module attributes {stable_mosaic.version = 11 : i64} {
  func.func @_value_kernel(%arg0: i32, %arg1: i32, %arg2: memref<1x16x16xbf16, #tpu.memory_space<vmem>>, %arg3: memref<1x16x256xbf16, #tpu.memory_space<vmem>>, %arg4: memref<1x16x256xf32, #tpu.memory_space<vmem>>) attributes {dimension_semantics = [#tpu.dimension_semantics<parallel>, #tpu.dimension_semantics<parallel>], iteration_bounds = array<i64: 2, 1>, scalar_prefetch = 0 : i64, scratch_operands = 0 : i64, tpu.core_type = #tpu.core_type<tc>, window_params = [{transform_indices = @transform_0, window_bounds = array<i64: 1, 16, 16>}, {transform_indices = @transform_1, window_bounds = array<i64: 1, 16, 256>}, {transform_indices = @transform_2, window_bounds = array<i64: 1, 16, 256>}]} {
    %c0 = arith.constant 0 : index
    %c0_0 = arith.constant 0 : index
    %c0_1 = arith.constant 0 : index
    %0 = vector.load %arg3[%c0, %c0_0, %c0_1] : memref<1x16x256xbf16, #tpu.memory_space<vmem>>, vector<1x16x256xbf16>
    %1 = vector.shape_cast %0 : vector<1x16x256xbf16> to vector<16x256xbf16>
    %c0_2 = arith.constant 0 : index
    %c0_3 = arith.constant 0 : index
    %c0_4 = arith.constant 0 : index
    %2 = vector.load %arg2[%c0_2, %c0_3, %c0_4] : memref<1x16x16xbf16, #tpu.memory_space<vmem>>, vector<1x16x16xbf16>
    %3 = vector.shape_cast %2 : vector<1x16x16xbf16> to vector<16x16xbf16>
    %cst = arith.constant dense<0.000000e+00> : vector<16x256xf32>
    %4 = tpu.matmul %3, %1, %cst {dimension_numbers = #tpu.dot_dimension_numbers<[1], [0], [0], [1], [0, 0, 1, 1], [], []>} : vector<16x16xbf16>, vector<16x256xbf16>, vector<16x256xf32> -> vector<16x256xf32>
    %5 = arith.extf %1 : vector<16x256xbf16> to vector<16x256xf32>
    %6 = arith.addf %4, %5 : vector<16x256xf32>
    %c0_5 = arith.constant 0 : index
    %c0_6 = arith.constant 0 : index
    %c0_7 = arith.constant 0 : index
    %7 = vector.load %arg4[%c0_5, %c0_6, %c0_7] : memref<1x16x256xf32, #tpu.memory_space<vmem>>, vector<1x16x256xf32>
    %8 = vector.shape_cast %7 : vector<1x16x256xf32> to vector<16x256xf32>
    %9 = vector.shape_cast %6 : vector<16x256xf32> to vector<1x16x256xf32>
    tpu.vector_store %arg4[%c0_5, %c0_6, %c0_7], %9 {strides = array<i32>} : memref<1x16x256xf32, #tpu.memory_space<vmem>>, vector<1x16x256xf32>,
    return
  }
  func.func @transform_0(%arg0: i32, %arg1: i32) -> (i32, i32, i32) {
    %c0_i32 = arith.constant 0 : i32
    %c0_i32_0 = arith.constant 0 : i32
    %c0_i32_1 = arith.constant 0 : i32
    return %arg0, %c0_i32, %c0_i32_0 : i32, i32, i32
  }
  func.func @transform_1(%arg0: i32, %arg1: i32) -> (i32, i32, i32) {
    %c0_i32 = arith.constant 0 : i32
    %c0_i32_0 = arith.constant 0 : i32
    return %arg0, %c0_i32, %arg1 : i32, i32, i32
  }
  func.func @transform_2(%arg0: i32, %arg1: i32) -> (i32, i32, i32) {
    %c0_i32 = arith.constant 0 : i32
    %c0_i32_0 = arith.constant 0 : i32
    return %arg0, %c0_i32, %arg1 : i32, i32, i32
  }
}

</mosaic_0001>

<bundles_post_ra>
// kernel: normed_cam_module.2
= control target key start
LH: loop header
LB: loop body
LE: loop exit
PB: predicated region body
PF: predicated region fallthrough
CT: control target
= control target key end

     0   :  { %s500_s11 = smov 0   ;;  %s502_s12 = smov 0   ;;  %s552_s0 = inlined_call_operand.<no memory space> [shape: f32[1], index: 0, kind: input, shape index: {}]   ;;  %s553_s1 = inlined_call_operand.vmem [shape: bf16[2,16,256], index: 1, kind: input, shape index: {}]   ;;  %s554_s2 = inlined_call_operand.vmem [shape: bf16[2,16,16], index: 2, kind: output, shape index: {}]  }
   0x1   :  { %7 = sst [smem:[#allocation3]] %s552_s0  ;;  %s504_s13 = smov 0  }
   0x2 LB: > { %s25_s0 = sadd.s32 1, %s475_s12  ;;  %p399_p0 = scmp.ge.s32.totalorder %s479_s13, 1  ;;  %s479_s13 = sphi %s504_s13, %s13_s13   ;;  %s475_s12 = sphi %s502_s12, %s556_s12   ;;  %s471_s11 = sphi %s500_s11, %s555_s11  }
   0x3   : > { %p27_p1 = scmp.ge.s32.totalorder %s25_s0, 2  ;;  %p132_p2 = scmp.lt.s32.totalorder %s479_s13, 3 }
   0x5   : > { %s558_s0 = smov (%p27_p1, %s25_s0), 0  ;;  %p133_p3 = pnand %p399_p0, %p132_p2 }
   0x6   : > { %p159_p4 = scmp.lt.s32.totalorder (!%p133_p3), %s471_s11, 1  ;;  %s317_s18 = sld [smem:[#allocation3]] (!%p133_p3) }
   0x7   : > { %136 = sbr.rel (%p133_p3) target bundleno = 574 (0x23e), region = 28 }
   0xc   : > { %s560_s11 = smov (!%p159_p4, %s471_s11), 1  ;;  %vm178_vm0 = vcmask 130048   ;;  %v481_v6 = vmov 0.0   ;;  %v233_v11 = vlaneseq  ;;  %vm323_vm13 = vcmask 125952  }
   0xd   : > { %s414_s14 = sshll.u32 %s560_s11, 4  ;;  %179 = vst.msk [vmem:[#allocation2] sm:$0xff] %vm178_vm0, %v481_v6  ;;  %s415_s19 = sshll.u32 %s560_s11, 3 }
   0xe   : > { %s166_s17 = scalar_lea.vmem %s553_s1, %s414_s14  ;;  %180 = vst.msk [vmem:[#allocation2 + $0x8] sm:$0xff] %vm178_vm0, %v481_v6  ;;  %v234_v13 = vshrl.u32 %v233_v11, 7  ;;  %v527_v14 = vand.u32 127, %v233_v11  ;;  %s172_s22 = scalar_lea.vmem %s554_s2, %s415_s19 }
   0xf   : > { %v406_v0 = vld [vmem:[%s166_s17] sm:$0xf]  ;;  %v417_v1 = vld [vmem:[%s166_s17 + $0x4] sm:$0xf0]  ;;  %v416_v2 = vld [vmem:[%s166_s17 + $0x4] sm:$0xf] }
  0x10   : > { %v407_v3 = vor.u32 %v417_v1, %v406_v0  ;;  %v408_v4 = vld [vmem:[%s166_s17 + $0x8] sm:$0xf0]  ;;  %vm238_vm1 = vcmp.eq.s32.totalorder %v234_v13, %v527_v14  ;;  %v235_v23 = vadd.s32 8, %v234_v13  ;;  %vm304_vm12 = vcmp.lt.s32.totalorder %v527_v14, 4 }
  0x11   : > { %v411_v5 = vor.u32 %v416_v2, %v408_v4 }
  0x12   : > { %202 = vmatpush.bf16.xpose.msra.mxu0 %v407_v3  ;;  %vm239_vm2 = vcmp.eq.s32.totalorder %v235_v23, %v527_v14 }
  0x13   : > { %216 = vmatpush.bf16.xpose.msra.mxu1 %v411_v5 }
  0x14   : > { %v183_v8 = vld [vmem:[#allocation2] sm:$0xff] }
  0x15   : > { %v184_v16 = vld [vmem:[#allocation2 + $0x8] sm:$0xff] }
  0x19   : > { %203 = vmatmul.bf16.vlgmr.msra.gmra.mxu0 %v407_v3 }
  0x1a   : > { %217 = vmatmul.bf16.vlgmr.msra.gmra.mxu1 %v411_v5 }
  0x96   : > { %v204_v7 = vpop.f32.mrf.mxu0 }
  0x97   : > { %v218_v9 = vpop.f32.mrf.mxu1 }
  0x98   : > { %v219_v10 = vadd.f32 %v218_v9, %v204_v7 }
  0x9a   : > { %v223_v12 = vadd.f32 %v219_v10, %v183_v8 }
  0x9c   : > { %226 = vst.msk [vmem:[#allocation2] sm:$0xff] %vm178_vm0, %v223_v12 }
  0x9e   : > { %v206_v15 = vpop.f32.mrf.mxu0 }
  0x9f   : > { %v220_v17 = vpop.f32.mrf.mxu1 }
  0xa0   : > { %v221_v18 = vadd.f32 %v220_v17, %v206_v15  ;;  %v318_v17 = vstv %s317_s18 }
  0xa2   : > { %v224_v19 = vadd.f32 %v221_v18, %v184_v16 }
  0xa3   : > { %v231_v20 = vld [vmem:[#allocation2] sm:$0xff] }
  0xa4   : > { %227 = vst.msk [vmem:[#allocation2 + $0x8] sm:$0xff] %vm178_vm0, %v224_v19  ;;  %v240_v21 = vsel %vm238_vm1, %v231_v20, 0.0 }
  0xa5   : > { %v242_v22 = vsel %vm178_vm0, %v240_v21, 0.0 }
  0xa6   : > { %243 = vadd.xlane.f32.xlu0 %v242_v22 }
  0xab   : > { %v232_v24 = vld [vmem:[#allocation2 + $0x8] sm:$0xff] }
  0xac   : > { %v241_v25 = vsel %vm239_vm2, %v232_v24, 0.0 }
  0xad   : > { %v245_v26 = vsel %vm178_vm0, %v241_v25, 0.0 }
  0xae   : > { %246 = vadd.xlane.f32.xlu0 %v245_v26  ;;  %v270_v27 = vadd.f32 %v245_v26, %v242_v22 }
  0xb0   : > { %v271_v28 = vrot.slane %v270_v27, 4 }
  0xb2   : > { %v272_v29 = vadd.f32 %v271_v28, %v270_v27 }
  0xb4   : > { %v273_v30 = vrot.slane %v272_v29, 2 }
  0xb6   : > { %v274_v31 = vadd.f32 %v273_v30, %v272_v29 }
  0xb8   : > { %v275_v32 = vrot.slane %v274_v31, 1 }
  0xba   : > { %v276_v33 = vadd.f32 %v275_v32, %v274_v31 }
  0xbc   : > { %v277_v34 = vmax.f32 %v276_v33, 1e-12 }
  0xbe   : > { %443 = vrsqrt.f32 %v277_v34  ;;  %vm284_vm7 = vweird.f32 %v277_v34 }
  0xc4   : > { %v444_v35 = vpop.eup %443 }
  0xc5   : > { %v279_v38 = vmul.f32 %v444_v35, %v277_v34  ;;  %vm285_vm4 = vweird.f32 %v444_v35 }
  0xc6   : > { %vm286_vm8 = vmor %vm284_vm7, %vm285_vm4 }
  0xc7   : > { %v280_v39 = vmul.f32 %v444_v35, %v279_v38 }
  0xc9   : > { %v281_v44 = vmul.f32 0.5, %v280_v39 }
  0xcb   : > { %v282_v47 = vsub.f32 1.5, %v281_v44 }
  0xcd   : > { %v283_v52 = vmul.f32 %v444_v35, %v282_v47 }
  0xcf   : > { %v287_v57 = vsel %vm286_vm8, %v444_v35, %v283_v52 }
 0x119   : > { %v244_v36 = vpop.xlane.xlu0 %243 }
 0x11a   : > { %v248_v37 = vmax.f32 %v244_v36, 1e-12 }
 0x11c   : > { %445 = vrsqrt.f32 %v248_v37  ;;  %vm256_vm5 = vweird.f32 %v248_v37 }
 0x121   : > { %v247_v40 = vpop.xlane.xlu0 %246 }
 0x122   : > { %v446_v41 = vpop.eup %445  ;;  %v249_v42 = vmax.f32 %v247_v40, 1e-12 }
 0x123   : > { %v251_v43 = vmul.f32 %v446_v41, %v248_v37  ;;  %vm257_vm3 = vweird.f32 %v446_v41 }
 0x124   : > { %447 = vrsqrt.f32 %v249_v42  ;;  %vm258_vm6 = vmor %vm256_vm5, %vm257_vm3  ;;  %vm266_vm10 = vweird.f32 %v249_v42 }
 0x125   : > { %v252_v45 = vmul.f32 %v446_v41, %v251_v43 }
 0x127   : > { %v253_v46 = vmul.f32 0.5, %v252_v45 }
 0x129   : > { %v254_v48 = vsub.f32 1.5, %v253_v46 }
 0x12a   : > { %v448_v49 = vpop.eup %447 }
 0x12b   : > { %v261_v50 = vmul.f32 %v448_v49, %v249_v42  ;;  %v255_v51 = vmul.f32 %v446_v41, %v254_v48  ;;  %vm267_vm9 = vweird.f32 %v448_v49 }
 0x12c   : > { %vm268_vm11 = vmor %vm266_vm10, %vm267_vm9 }
 0x12d   : > { %v262_v53 = vmul.f32 %v448_v49, %v261_v50  ;;  %v259_v54 = vsel %vm258_vm6, %v446_v41, %v255_v51 }
 0x12e   : > { %v288_v55 = vmul.f32 %v259_v54, %v231_v20 }
 0x12f   : > { %v263_v56 = vmul.f32 0.5, %v262_v53 }
 0x130   : > { %v290_v58 = vmul.f32 %v288_v55, %v287_v57 }
 0x131   : > { %v264_v59 = vsub.f32 1.5, %v263_v56 }
 0x132   : > { %v292_v60 = vsel %vm178_vm0, %v290_v58, -inf }
 0x133   : > { %v265_v61 = vmul.f32 %v448_v49, %v264_v59  ;;  %293 = vmax.xlane.f32.xlu1 %v292_v60 }
 0x135   : > { %v269_v62 = vsel %vm268_vm11, %v448_v49, %v265_v61 }
 0x136   : > { %v289_v63 = vmul.f32 %v269_v62, %v232_v24 }
 0x138   : > { %v291_v0 = vmul.f32 %v289_v63, %v287_v57 }
 0x13a   : > { %v295_v1 = vsel %vm178_vm0, %v291_v0, -inf }
 0x13b   : > { %296 = vmax.xlane.f32.xlu1 %v295_v1 }
 0x1a6   : > { %v294_v2 = vpop.xlane.xlu1 %293 }
 0x1a7   : > { %v298_v3 = vsub.f32 %v294_v2, %v290_v58 }
 0x1a9   : > { %v300_v4 = vmul.f32 1.442695, %v298_v3 }
 0x1ab   : > { %449 = vpow2.f32 %v300_v4 }
 0x1ae   : > { %v297_v5 = vpop.xlane.xlu1 %296 }
 0x1af   : > { %v299_v6 = vsub.f32 %v297_v5, %v291_v0 }
 0x1b1   : > { %v450_v7 = vpop.eup %449  ;;  %v302_v8 = vmul.f32 1.442695, %v299_v6 }
 0x1b2   : > { %v305_v9 = vsel %vm304_vm12, %v450_v7, 0.0 }
 0x1b3   : > { %451 = vpow2.f32 %v302_v8  ;;  %v307_v10 = vsel %vm178_vm0, %v305_v9, 0.0 }
 0x1b4   : > { %308 = vadd.xlane.f32.xlu2 %v307_v10 }
 0x1b9   : > { %v452_v11 = vpop.eup %451 }
 0x1ba   : > { %v306_v12 = vsel %vm304_vm12, %v452_v11, 0.0 }
 0x1bb   : > { %v310_v13 = vsel %vm178_vm0, %v306_v12, 0.0 }
 0x1bc   : > { %311 = vadd.xlane.f32.xlu2 %v310_v13 }
 0x227   : > { %v309_v15 = vpop.xlane.xlu2 %308 }
 0x228   : > { %453 = vrcp.f32 %v309_v15 }
 0x22e   : > { %v454_v16 = vpop.eup %453 }
 0x22f   : > { %v315_v14 = vmul.f32 %v454_v16, %v305_v9  ;;  %v312_v18 = vpop.xlane.xlu2 %311 }
 0x230   : > { %455 = vrcp.f32 %v312_v18 }
 0x231   : > { %v319_v19 = vmul.f32 %v318_v17, %v315_v14 }
 0x233   : > { %v321_v20 = vpack.c.bf16 %v319_v19, %v319_v19 }
 0x235   : > { %324 = vst.msk [vmem:[%s172_s22] sm:$0xf] %vm323_vm13, %v321_v20 }
 0x236   : > { %v456_v21 = vpop.eup %455 }
 0x237   : > { %v316_v22 = vmul.f32 %v456_v21, %v306_v12 }
 0x239   : > { %v320_v23 = vmul.f32 %v318_v17, %v316_v22 }
 0x23b   : > { %v322_v24 = vpack.c.bf16 %v320_v23, %v320_v23 }
 0x23d   : > { %325 = vst.msk [vmem:[%s172_s22 + $0x4] sm:$0xf] %vm323_vm13, %v322_v24 }
 0x23e PF: > { %s13_s13 = sadd.s32 1, %s479_s13   ;;  %s555_s11 = smov %s475_s12 }
 0x23f   : > { %p10_p5 = scmp.ge.s32.totalorder %s13_s13, 4   ;;  %s556_s12 = smov %s558_s0 }
 0x241   :  { %12 = sbr.rel (!%p10_p5) target bundleno = 2 (0x2), region = 66 }

// kernel: normed_cam_module.3
= control target key start
LH: loop header
LB: loop body
LE: loop exit
PB: predicated region body
PF: predicated region fallthrough
CT: control target
= control target key end

     0   :  { %s458_s9 = smov 0   ;;  %s460_s10 = smov 0   ;;  %s494_s0 = inlined_call_operand.vmem [shape: bf16[2,16,16], index: 0, kind: input, shape index: {}]   ;;  %s495_s1 = inlined_call_operand.vmem [shape: bf16[2,16,256], index: 1, kind: input, shape index: {}]   ;;  %s496_s2 = inlined_call_operand.vmem [shape: f32[2,16,256], index: 2, kind: output, shape index: {}]  }
   0x1   :  { %s462_s11 = smov 0  }
   0x2 LB: > { %s24_s12 = sadd.s32 1, %s437_s10  ;;  %p366_p0 = scmp.ge.s32.totalorder %s441_s11, 1  ;;  %s441_s11 = sphi %s462_s11, %s12_s11   ;;  %s437_s10 = sphi %s460_s10, %s498_s10   ;;  %s433_s9 = sphi %s458_s9, %s497_s9  }
   0x3   : > { %p26_p1 = scmp.ge.s32.totalorder %s24_s12, 2  ;;  %p143_p2 = scmp.lt.s32.totalorder %s441_s11, 3 }
   0x5   : > { %s500_s12 = smov (%p26_p1, %s24_s12), 0  ;;  %p144_p3 = pnand %p366_p0, %p143_p2 }
   0x6   : > { %p178_p4 = scmp.lt.s32.totalorder (!%p144_p3), %s433_s9, 1 }
   0x7   : > { %147 = sbr.rel (%p144_p3) target bundleno = 159 (0x9f), region = 28 }
   0xc   : > { %s502_s9 = smov (!%p178_p4, %s433_s9), 1  ;;  %vm227_vm0 = vcmask 130048  }
   0xd   : > { %s390_s13 = sshll.u32 %s502_s9, 4  ;;  %s389_s14 = sshll.u32 %s502_s9, 3 }
   0xe   : > { %s191_s17 = scalar_lea.vmem %s495_s1, %s390_s13  ;;  %s182_s20 = scalar_lea.vmem %s494_s0, %s389_s14 }
   0xf   : > { %v379_v0 = vld [vmem:[%s191_s17] sm:$0xf]  ;;  %v393_v1 = vld [vmem:[%s191_s17 + $0x4] sm:$0xf0]  ;;  %v392_v2 = vld [vmem:[%s191_s17 + $0x4] sm:$0xf] }
  0x10   : > { %v380_v3 = vor.u32 %v393_v1, %v379_v0  ;;  %v381_v4 = vld [vmem:[%s191_s17 + $0x8] sm:$0xf0]  ;;  %v394_v6 = vld [vmem:[%s182_s20] sm:$0xff]  ;;  %s391_s21 = sshll.u32 %s502_s9, 5 }
  0x11   : > { %v384_v5 = vor.u32 %v392_v2, %v381_v4  ;;  %v204_v7 = vld [vmem:[%s191_s17] sm:$0xff]  ;;  %s201_s24 = scalar_lea.vmem %s496_s2, %s391_s21  ;;  %v205_v14 = vld [vmem:[%s191_s17 + $0x8] sm:$0xff] }
  0x12   : > { %238 = vmatpush.bf16.msra.mxu0 %v380_v3  ;;  %v208_v8 = vunpack.c.l.bf16 %v204_v7  ;;  %v209_v9 = vunpack.c.h.bf16 %v204_v7  ;;  %v210_v15 = vunpack.c.l.bf16 %v205_v14  ;;  %v211_v16 = vunpack.c.h.bf16 %v205_v14 }
  0x13   : > { %252 = vmatpush.bf16.msra.mxu1 %v384_v5 }
  0x15   : > { %385 = vmatmul.msk.bf16.vlgmr.msra.gmra.mxu0 %vm227_vm0, %v394_v6 }
  0x16   : > { %386 = vmatmul.msk.bf16.vlgmr.msra.gmra.mxu1 %vm227_vm0, %v394_v6 }
  0x92   : > { %v240_v10 = vpop.f32.mrf.mxu0 }
  0x93   : > { %v241_v11 = vadd.f32 %v240_v10, %v208_v8  ;;  %v254_v12 = vpop.f32.mrf.mxu1 }
  0x94   : > { %v255_v13 = vadd.f32 %v254_v12, %v209_v9 }
  0x95   : > { %259 = vst [vmem:[%s201_s24] sm:$0xff] %v241_v11 }
  0x96   : > { %260 = vst [vmem:[%s201_s24 + $0x8] sm:$0xff] %v255_v13 }
  0x9a   : > { %v242_v17 = vpop.f32.mrf.mxu0 }
  0x9b   : > { %v243_v18 = vadd.f32 %v242_v17, %v210_v15  ;;  %v256_v19 = vpop.f32.mrf.mxu1 }
  0x9c   : > { %v257_v20 = vadd.f32 %v256_v19, %v211_v16 }
  0x9d   : > { %261 = vst [vmem:[%s201_s24 + $0x10] sm:$0xff] %v243_v18 }
  0x9e   : > { %262 = vst [vmem:[%s201_s24 + $0x18] sm:$0xff] %v257_v20 }
  0x9f PF: > { %s12_s11 = sadd.s32 1, %s441_s11   ;;  %s497_s9 = smov %s437_s10 }
  0xa0   : > { %p9_p5 = scmp.ge.s32.totalorder %s12_s11, 4   ;;  %s498_s10 = smov %s500_s12 }
  0xa2   :  { %11 = sbr.rel (!%p9_p5) target bundleno = 2 (0x2), region = 61 }

</bundles_post_ra>
